<compile_context>
chip_gen: v7x
topology: tpu7x:2x2x1
jax: 0.10.0
libtpu: 0.0.40
codegen_flags: <defaults>
</compile_context>

<pallas_src>
import jax
import jax.numpy as jnp
from jax import lax
from jax.experimental import pallas as pl
from jax.experimental.pallas import tpu as pltpu


# Beyond this many table rows the one-hot MXU gather (D*N*TB MACs for D*TB
# useful values) stops paying off vs. a DMA gather.
_ONEHOT_MAX_ROWS = 4096


def _choose_tile_batch(batch_size, cap=512):
    """Batch rows per grid step, mapped to the 128-lane axis.

    Multiple of 128 (unmasked lane-dense stores), capped so the grid has at
    least 2 steps whenever the batch allows (so ("parallel",) semantics can
    shard tiles across v7x's two TensorCores), and capped at `cap` to bound
    one-hot scratch / vreg pressure (512 fits every generation's VMEM here).
    """
    half = -(-batch_size // 2)                 # cdiv(B, 2)
    tb = 128 * max(1, half // 128)
    return int(min(tb, cap))


def _pad_and_tile_indices(idx, tile_batch):
    """1-D indices -> (n_tiles, TB) int32. Pad rows gather row 0; they are
    discarded by the output slice."""
    b = idx.shape[0]
    b_pad = -(-b // tile_batch) * tile_batch
    idx_p = jnp.pad(idx.astype(jnp.int32), (0, b_pad - b))
    return idx_p.reshape(b_pad // tile_batch, tile_batch), b_pad


def _resident_spec(shape, single_buffer):
    """Constant index_map -> single DMA, block resident across the grid.
    single_buffer=True also requests Buffered(1) so the resident block is not
    double-buffered (halves its VMEM cost; matters on v7x's 64 MiB VMEM)."""
    index_map = lambda i: (0,) * len(shape)
    if single_buffer:
        return pl.BlockSpec(shape, index_map, pipeline_mode=pl.Buffered(1))
    return pl.BlockSpec(shape, index_map)


def _vmem_limit_bytes(resident_bytes, per_tile_bytes):
    """Scoped-VMEM limit from the actual footprint.

    2x on residents (still double-buffered if Buffered(1) is unavailable),
    4x per-tile headroom for in-kernel intermediates + pipelined output tiles,
    plus fixed margin for Mosaic internal scratch. Never below the 32 MiB
    scoped default; capped by the physical VMEM of this generation.
    """
    est = 2 * int(resident_bytes) + 4 * int(per_tile_bytes) + (8 << 20)
    cap = 64 << 20                      # conservative physical cap (v7x)
    try:
        cap = int(pltpu.get_tpu_info().vmem_capacity_bytes)
    except Exception:
        pass
    return int(min(max(est, 32 << 20), int(cap * 0.9)))


# ---------------------------------------------------------------------------
# Dot predictor kernel:  out[b] = sum_d  A[idx_a[b], d] * B[idx_b[b], d]
# ---------------------------------------------------------------------------
def _dot_kernel(ia_ref, ib_ref, ta_ref, tb_ref, o_ref):
    # ia/ib : (n_tiles, TB) resident int32 indices (batch on lanes)
    # ta/tb : (D, N) transposed embedding tables, fully resident in VMEM
    # o     : (1, TB) lane-dense output tile
    i = pl.program_id(0)
    lanes = o_ref.shape[1]
    ia = ia_ref[pl.ds(i, 1), :]                                  # (1, TB)
    ib = ib_ref[pl.ds(i, 1), :]
    na = ta_ref.shape[1]
    nb = tb_ref.shape[1]
    onehot_a = (lax.broadcasted_iota(jnp.int32, (na, lanes), 0)
                == ia).astype(ta_ref.dtype)                      # (Na, TB)
    onehot_b = (lax.broadcasted_iota(jnp.int32, (nb, lanes), 0)
                == ib).astype(tb_ref.dtype)                      # (Nb, TB)
    # MXU gather: (D, N) @ (N, TB) -> (D, TB); batch stays on lanes.
    a_t = jnp.dot(ta_ref[...], onehot_a, preferred_element_type=jnp.float32)
    b_t = jnp.dot(tb_ref[...], onehot_b, preferred_element_type=jnp.float32)
    # VPU product + sublane (XLU) reduce -> (1, TB), unmasked store.
    o_ref[...] = jnp.sum(a_t * b_t, axis=0, keepdims=True)


def make_dot_predictor(emb_first, emb_second, *, table_dtype=jnp.float32,
                       tile_batch=None):
    na, d = emb_first.shape
    nb = emb_second.shape[0]
    if max(na, nb) > _ONEHOT_MAX_ROWS:
        # TODO(synk): manual double-buffered HBM DMA gather for large tables.
        raise NotImplementedError("table too large for one-hot MXU gather")
    # Hoisted out of the per-call path: batch-on-lanes orientation.
    ta = emb_first.T.astype(table_dtype)         # (D, Na)
    tb = emb_second.T.astype(table_dtype)        # (D, Nb)
    itemsize = jnp.dtype(table_dtype).itemsize

    def predict(idx_first, idx_second):
        b = idx_first.shape[0]
        lanes = tile_batch or _choose_tile_batch(b)
        ia, b_pad = _pad_and_tile_indices(idx_first, lanes)
        ib, _ = _pad_and_tile_indices(idx_second, lanes)
        n_tiles = b_pad // lanes
        resident = (ta.size + tb.size) * itemsize + (ia.size + ib.size) * 4
        per_tile = ((na + nb) * lanes * itemsize     # one-hot masks
                    + 2 * d * lanes * 4              # gathered a_t / b_t
                    + 2 * lanes * 4)                 # pipelined output tiles
        vmem_limit = _vmem_limit_bytes(resident, per_tile)

        def build(single_buffer):
            return pl.pallas_call(
                _dot_kernel,
                out_shape=jax.ShapeDtypeStruct((1, b_pad), jnp.float32),
                grid=(n_tiles,),
                in_specs=[
                    _resident_spec(ia.shape, single_buffer),
                    _resident_spec(ib.shape, single_buffer),
                    _resident_spec(ta.shape, single_buffer),
                    _resident_spec(tb.shape, single_buffer),
                ],
                out_specs=pl.BlockSpec((1, lanes), lambda i: (0, i)),
                compiler_params=pltpu.CompilerParams(
                    dimension_semantics=("parallel",),
                    vmem_limit_bytes=vmem_limit),
            )

        try:
            out = build(True)(ia, ib, ta, tb)
        except Exception:
            # Buffered(1) not supported on this jax version -> default buffering.
            out = build(False)(ia, ib, ta, tb)
        return out[0, :b]

    return predict


# ---------------------------------------------------------------------------
# DNN predictor kernel (dnn_predictor_dims = [2*D, H, 1]), fully fused:
#   layer-1 pre-activation = F @ twohot  (single MXU matmul per tile),
#   where F already contains W1 applied to every table row and b1 folded in.
# ---------------------------------------------------------------------------
def _dnn_kernel(ia_ref, ib_ref, f_ref, w2_ref, b2_ref, o_ref):
    i = pl.program_id(0)
    lanes = o_ref.shape[1]
    ia = ia_ref[pl.ds(i, 1), :]                  # (1, TB), values in [0, Na)
    ib = ib_ref[pl.ds(i, 1), :]                  # (1, TB), offset into [Na, Na+Nb)
    n_total = f_ref.shape[1]                     # Na + Nb
    rows = lax.broadcasted_iota(jnp.int32, (n_total, lanes), 0)
    # "two-hot": exactly two ones per column (ia < Na <= ib, never collide).
    twohot = ((rows == ia) | (rows == ib)).astype(f_ref.dtype)   # (Na+Nb, TB)
    # Fused gather + layer 1: (H, Na+Nb) @ (Na+Nb, TB) -> (H, TB), b1 folded.
    h = jnp.dot(f_ref[...], twohot, preferred_element_type=jnp.float32)
    h = jnp.maximum(h, 0.0)                                      # ReLU (VPU)
    # Layer 2 (H -> 1): VPU multiply + sublane reduce, not an N=1 matmul.
    o_ref[...] = jnp.sum(h * w2_ref[...], axis=0, keepdims=True) + b2_ref[...]


def make_dnn_predictor(emb_first, emb_second, w1, b1, w2, b2, *,
                       table_dtype=jnp.float32, tile_batch=None):
    na, d = emb_first.shape
    nb = emb_second.shape[0]
    h_dim = w1.shape[1]
    n_total = na + nb
    if n_total > _ONEHOT_MAX_ROWS:
        # TODO(synk): manual double-buffered HBM DMA gather for large tables.
        raise NotImplementedError("table too large for one-hot MXU gather")
    # Fused layer-1 tables (hoisted out of the per-call path):
    #   F[:, n]      = W1a^T e_first[n] + b1    (b1 folded in once; each
    #   F[:, Na + m] = W1b^T e_second[m]         two-hot column sums to 2 ones)
    fa = jnp.dot(w1[:d].T, emb_first.T,
                 precision=lax.Precision.HIGHEST) + b1[:, None]   # (H, Na)
    fb = jnp.dot(w1[d:].T, emb_second.T,
                 precision=lax.Precision.HIGHEST)                 # (H, Nb)
    f = jnp.concatenate([fa, fb], axis=1).astype(table_dtype)     # (H, Na+Nb)
    w2_c = w2.reshape(h_dim, 1).astype(jnp.float32)
    b2_c = b2.reshape(1, 1).astype(jnp.float32)
    itemsize = jnp.dtype(table_dtype).itemsize

    def predict(idx_first, idx_second):
        b = idx_first.shape[0]
        lanes = tile_batch or _choose_tile_batch(b)
        ia, b_pad = _pad_and_tile_indices(idx_first, lanes)
        ib, _ = _pad_and_tile_indices(idx_second, lanes)
        ib = ib + na                 # second table lives at columns [Na, Na+Nb)
        n_tiles = b_pad // lanes
        resident = (f.size * itemsize + (w2_c.size + b2_c.size) * 4
                    + (ia.size + ib.size) * 4)
        per_tile = (n_total * lanes * itemsize      # two-hot mask
                    + h_dim * lanes * 4             # layer-1 activations
                    + 2 * lanes * 4)                # pipelined output tiles
        vmem_limit = _vmem_limit_bytes(resident, per_tile)

        def build(single_buffer):
            return pl.pallas_call(
                _dnn_kernel,
                out_shape=jax.ShapeDtypeStruct((1, b_pad), jnp.float32),
                grid=(n_tiles,),
                in_specs=[
                    _resident_spec(ia.shape, single_buffer),
                    _resident_spec(ib.shape, single_buffer),
                    _resident_spec(f.shape, single_buffer),
                    _resident_spec(w2_c.shape, single_buffer),
                    _resident_spec(b2_c.shape, single_buffer),
                ],
                out_specs=pl.BlockSpec((1, lanes), lambda i: (0, i)),
                compiler_params=pltpu.CompilerParams(
                    dimension_semantics=("parallel",),
                    vmem_limit_bytes=vmem_limit),
            )

        try:
            out = build(True)(ia, ib, f, w2_c, b2_c)
        except Exception:
            out = build(False)(ia, ib, f, w2_c, b2_c)
        return out[0, :b]            # .squeeze(dim=-1) in the PyTorch DNNPredictor

    return predict


# ---------------------------------------------------------------------------
# Pure-JAX references (semantics of the PyTorch predictors)
# ---------------------------------------------------------------------------
def dot_predictor_ref(emb_first, emb_second, idx_first, idx_second):
    a = emb_first[idx_first]
    b = emb_second[idx_second]
    return jnp.sum(a * b, axis=-1)


def dnn_predictor_ref(emb_first, emb_second, idx_first, idx_second,
                      w1, b1, w2, b2):
    a = emb_first[idx_first]
    b = emb_second[idx_second]
    x = jnp.concatenate([a, b], axis=-1)
    h = jnp.maximum(jnp.dot(x, w1, precision=lax.Precision.HIGHEST) + b1, 0.0)
    return (jnp.dot(h, w2, precision=lax.Precision.HIGHEST) + b2)[:, 0]


if __name__ == "__main__":
    # Synthetic "graph"/config consistent with the module:
    #   ntypes = ['user', 'item'], one primary etype, graph_embedding_dims[0]=32,
    #   embedding_aggregator='concat' -> final embedding dim per node type = 32.
    #   dnn_predictor_dims = [-1, 32, 1] -> [2*32, 32, 1].
    NUM_USERS, NUM_ITEMS = 64, 96
    D = 32          # final_single_embedding_dim
    H = 32          # dnn hidden dim
    B = 200         # batch (not a multiple of 128 -> exercises padding + 2 tiles)

    key = jax.random.PRNGKey(0)
    k_eu, k_ei, k_ia, k_ib, k_w1, k_b1, k_w2, k_b2 = jax.random.split(key, 8)

    # provided_embeddings = {'user': (NUM_USERS, D), 'item': (NUM_ITEMS, D)}
    emb_user = jax.random.normal(k_eu, (NUM_USERS, D), dtype=jnp.float32)
    emb_item = jax.random.normal(k_ei, (NUM_ITEMS, D), dtype=jnp.float32)

    # first = {'name': 'user', 'index': idx_first}
    # second = {'name': 'item', 'index': idx_second}
    idx_first = jax.random.randint(k_ia, (B,), 0, NUM_USERS, dtype=jnp.int32)
    idx_second = jax.random.randint(k_ib, (B,), 0, NUM_ITEMS, dtype=jnp.int32)

    # DNNPredictor parameters (Linear(2D->H), ReLU, Linear(H->1)).
    w1 = jax.random.normal(k_w1, (2 * D, H), dtype=jnp.float32) * 0.1
    b1 = jax.random.normal(k_b1, (H,), dtype=jnp.float32) * 0.1
    w2 = jax.random.normal(k_w2, (H, 1), dtype=jnp.float32) * 0.1
    b2 = jax.random.normal(k_b2, (1,), dtype=jnp.float32) * 0.1

    # ----- predictor == 'dot' path -----
    dot_predict = make_dot_predictor(emb_user, emb_item)
    score_dot = dot_predict(idx_first, idx_second)
    jax.block_until_ready(score_dot)
    ref_dot = dot_predictor_ref(emb_user, emb_item, idx_first, idx_second)
    assert score_dot.shape == (B,)
    assert jnp.allclose(score_dot, ref_dot, atol=1e-3, rtol=1e-3)

    # ----- predictor == 'dnn' path -----
    # Tolerance slightly loosened vs. a pure elementwise check: the fused
    # F = W1^T @ table precompute changes the f32 accumulation order.
    dnn_predict = make_dnn_predictor(emb_user, emb_item, w1, b1, w2, b2)
    score_dnn = dnn_predict(idx_first, idx_second)
    jax.block_until_ready(score_dnn)
    ref_dnn = dnn_predictor_ref(emb_user, emb_item, idx_first, idx_second,
                                w1, b1, w2, b2)
    assert score_dnn.shape == (B,)
    assert jnp.allclose(score_dnn, ref_dnn, atol=1e-3, rtol=1e-3)

    # TODO(synk): aggregate_embeddings (GCN/LightGCN/GAT/NGCF message passing over
    # a DGL heterograph) is not part of forward() and needs graph structure, so it
    # is not reproduced here.
    print("KERNEL_OK")
</pallas_src>

<mosaic_0001>
module attributes {stable_mosaic.version = 11 : i64} {
  func.func @_dot_kernel(%arg0: i32, %arg1: memref<2x128xi32, #tpu.memory_space<vmem>>, %arg2: memref<2x128xi32, #tpu.memory_space<vmem>>, %arg3: memref<32x64xf32, #tpu.memory_space<vmem>>, %arg4: memref<32x96xf32, #tpu.memory_space<vmem>>, %arg5: memref<1x128xf32, #tpu.memory_space<vmem>>) attributes {dimension_semantics = [#tpu.dimension_semantics<parallel>], iteration_bounds = array<i64: 2>, scalar_prefetch = 0 : i64, scratch_operands = 0 : i64, tpu.core_type = #tpu.core_type<tc>, window_params = [{pipeline_mode = #tpu.pipeline_mode<synchronous>, transform_indices = @transform_0, window_bounds = array<i64: 2, 128>}, {pipeline_mode = #tpu.pipeline_mode<synchronous>, transform_indices = @transform_1, window_bounds = array<i64: 2, 128>}, {pipeline_mode = #tpu.pipeline_mode<synchronous>, transform_indices = @transform_2, window_bounds = array<i64: 32, 64>}, {pipeline_mode = #tpu.pipeline_mode<synchronous>, transform_indices = @transform_3, window_bounds = array<i64: 32, 96>}, {transform_indices = @transform_4, window_bounds = array<i64: 1, 128>}]} {
    %0 = arith.index_cast %arg0 : i32 to index
    %c0 = arith.constant 0 : index
    %1 = vector.load %arg1[%0, %c0] : memref<2x128xi32, #tpu.memory_space<vmem>>, vector<1x128xi32>
    %2 = arith.index_cast %arg0 : i32 to index
    %c0_0 = arith.constant 0 : index
    %3 = vector.load %arg2[%2, %c0_0] : memref<2x128xi32, #tpu.memory_space<vmem>>, vector<1x128xi32>
    %4 = tpu.iota {dimensions = array<i32: 0>} : vector<64x128xi32>
    %5 = vector.broadcast %1 : vector<1x128xi32> to vector<64x128xi32>
    %6 = arith.cmpi eq, %4, %5 : vector<64x128xi32>
    %7 = arith.extui %6 : vector<64x128xi1> to vector<64x128xi32>
    %8 = arith.sitofp %7 : vector<64x128xi32> to vector<64x128xf32>
    %9 = tpu.iota {dimensions = array<i32: 0>} : vector<96x128xi32>
    %10 = vector.broadcast %3 : vector<1x128xi32> to vector<96x128xi32>
    %11 = arith.cmpi eq, %9, %10 : vector<96x128xi32>
    %12 = arith.extui %11 : vector<96x128xi1> to vector<96x128xi32>
    %13 = arith.sitofp %12 : vector<96x128xi32> to vector<96x128xf32>
    %c0_1 = arith.constant 0 : index
    %c0_2 = arith.constant 0 : index
    %14 = vector.load %arg3[%c0_1, %c0_2] : memref<32x64xf32, #tpu.memory_space<vmem>>, vector<32x64xf32>
    %cst = arith.constant dense<0.000000e+00> : vector<32x128xf32>
    %15 = tpu.matmul %14, %8, %cst {dimension_numbers = #tpu.dot_dimension_numbers<[1], [0], [0], [1], [0, 0, 1, 1], [], []>} : vector<32x64xf32>, vector<64x128xf32>, vector<32x128xf32> -> vector<32x128xf32>
    %c0_3 = arith.constant 0 : index
    %c0_4 = arith.constant 0 : index
    %16 = vector.load %arg4[%c0_3, %c0_4] : memref<32x96xf32, #tpu.memory_space<vmem>>, vector<32x96xf32>
    %cst_5 = arith.constant dense<0.000000e+00> : vector<32x128xf32>
    %17 = tpu.matmul %16, %13, %cst_5 {dimension_numbers = #tpu.dot_dimension_numbers<[1], [0], [0], [1], [0, 0, 1, 1], [], []>} : vector<32x96xf32>, vector<96x128xf32>, vector<32x128xf32> -> vector<32x128xf32>
    %18 = arith.mulf %15, %17 : vector<32x128xf32>
    %cst_6 = arith.constant dense<0.000000e+00> : vector<128xf32>
    %19 = vector.multi_reduction <add>, %18, %cst_6 [0] : vector<32x128xf32> to vector<128xf32>
    %20 = vector.shape_cast %19 : vector<128xf32> to vector<1x128xf32>
    %c0_7 = arith.constant 0 : index
    %c0_8 = arith.constant 0 : index
    %21 = vector.load %arg5[%c0_7, %c0_8] : memref<1x128xf32, #tpu.memory_space<vmem>>, vector<1x128xf32>
    tpu.vector_store %arg5[%c0_7, %c0_8], %20 {strides = array<i32>} : memref<1x128xf32, #tpu.memory_space<vmem>>, vector<1x128xf32>,
    return
  }
  func.func @transform_0(%arg0: i32) -> (i32, i32) {
    %c0_i32 = arith.constant 0 : i32
    %c0_i32_0 = arith.constant 0 : i32
    %c0_i32_1 = arith.constant 0 : i32
    return %c0_i32, %c0_i32_0 : i32, i32
  }
  func.func @transform_1(%arg0: i32) -> (i32, i32) {
    %c0_i32 = arith.constant 0 : i32
    %c0_i32_0 = arith.constant 0 : i32
    %c0_i32_1 = arith.constant 0 : i32
    return %c0_i32, %c0_i32_0 : i32, i32
  }
  func.func @transform_2(%arg0: i32) -> (i32, i32) {
    %c0_i32 = arith.constant 0 : i32
    %c0_i32_0 = arith.constant 0 : i32
    %c0_i32_1 = arith.constant 0 : i32
    return %c0_i32, %c0_i32_0 : i32, i32
  }
  func.func @transform_3(%arg0: i32) -> (i32, i32) {
    %c0_i32 = arith.constant 0 : i32
    %c0_i32_0 = arith.constant 0 : i32
    %c0_i32_1 = arith.constant 0 : i32
    return %c0_i32, %c0_i32_0 : i32, i32
  }
  func.func @transform_4(%arg0: i32) -> (i32, i32) {
    %c0_i32 = arith.constant 0 : i32
    %c0_i32_0 = arith.constant 0 : i32
    return %c0_i32, %arg0 : i32, i32
  }
}

module attributes {stable_mosaic.version = 11 : i64} {
  func.func @_dot_kernel(%arg0: i32, %arg1: memref<2x128xi32, #tpu.memory_space<vmem>>, %arg2: memref<2x128xi32, #tpu.memory_space<vmem>>, %arg3: memref<32x64xf32, #tpu.memory_space<vmem>>, %arg4: memref<32x96xf32, #tpu.memory_space<vmem>>, %arg5: memref<1x128xf32, #tpu.memory_space<vmem>>) attributes {dimension_semantics = [#tpu.dimension_semantics<parallel>], iteration_bounds = array<i64: 2>, scalar_prefetch = 0 : i64, scratch_operands = 0 : i64, tpu.core_type = #tpu.core_type<tc>, window_params = [{pipeline_mode = #tpu.pipeline_mode<synchronous>, transform_indices = @transform_0, window_bounds = array<i64: 2, 128>}, {pipeline_mode = #tpu.pipeline_mode<synchronous>, transform_indices = @transform_1, window_bounds = array<i64: 2, 128>}, {pipeline_mode = #tpu.pipeline_mode<synchronous>, transform_indices = @transform_2, window_bounds = array<i64: 32, 64>}, {pipeline_mode = #tpu.pipeline_mode<synchronous>, transform_indices = @transform_3, window_bounds = array<i64: 32, 96>}, {transform_indices = @transform_4, window_bounds = array<i64: 1, 128>}]} {
    %0 = arith.index_cast %arg0 : i32 to index
    %c0 = arith.constant 0 : index
    %1 = vector.load %arg1[%0, %c0] : memref<2x128xi32, #tpu.memory_space<vmem>>, vector<1x128xi32>
    %2 = arith.index_cast %arg0 : i32 to index
    %c0_0 = arith.constant 0 : index
    %3 = vector.load %arg2[%2, %c0_0] : memref<2x128xi32, #tpu.memory_space<vmem>>, vector<1x128xi32>
    %4 = tpu.iota {dimensions = array<i32: 0>} : vector<64x128xi32>
    %5 = vector.broadcast %1 : vector<1x128xi32> to vector<64x128xi32>
    %6 = arith.cmpi eq, %4, %5 : vector<64x128xi32>
    %7 = arith.extui %6 : vector<64x128xi1> to vector<64x128xi32>
    %8 = arith.sitofp %7 : vector<64x128xi32> to vector<64x128xf32>
    %9 = tpu.iota {dimensions = array<i32: 0>} : vector<96x128xi32>
    %10 = vector.broadcast %3 : vector<1x128xi32> to vector<96x128xi32>
    %11 = arith.cmpi eq, %9, %10 : vector<96x128xi32>
    %12 = arith.extui %11 : vector<96x128xi1> to vector<96x128xi32>
    %13 = arith.sitofp %12 : vector<96x128xi32> to vector<96x128xf32>
    %c0_1 = arith.constant 0 : index
    %c0_2 = arith.constant 0 : index
    %14 = vector.load %arg3[%c0_1, %c0_2] : memref<32x64xf32, #tpu.memory_space<vmem>>, vector<32x64xf32>
    %cst = arith.constant dense<0.000000e+00> : vector<32x128xf32>
    %15 = tpu.matmul %14, %8, %cst {dimension_numbers = #tpu.dot_dimension_numbers<[1], [0], [0], [1], [0, 0, 1, 1], [], []>} : vector<32x64xf32>, vector<64x128xf32>, vector<32x128xf32> -> vector<32x128xf32>
    %c0_3 = arith.constant 0 : index
    %c0_4 = arith.constant 0 : index
    %16 = vector.load %arg4[%c0_3, %c0_4] : memref<32x96xf32, #tpu.memory_space<vmem>>, vector<32x96xf32>
    %cst_5 = arith.constant dense<0.000000e+00> : vector<32x128xf32>
    %17 = tpu.matmul %16, %13, %cst_5 {dimension_numbers = #tpu.dot_dimension_numbers<[1], [0], [0], [1], [0, 0, 1, 1], [], []>} : vector<32x96xf32>, vector<96x128xf32>, vector<32x128xf32> -> vector<32x128xf32>
    %18 = arith.mulf %15, %17 : vector<32x128xf32>
    %cst_6 = arith.constant dense<0.000000e+00> : vector<128xf32>
    %19 = vector.multi_reduction <add>, %18, %cst_6 [0] : vector<32x128xf32> to vector<128xf32>
    %20 = vector.shape_cast %19 : vector<128xf32> to vector<1x128xf32>
    %c0_7 = arith.constant 0 : index
    %c0_8 = arith.constant 0 : index
    %21 = vector.load %arg5[%c0_7, %c0_8] : memref<1x128xf32, #tpu.memory_space<vmem>>, vector<1x128xf32>
    tpu.vector_store %arg5[%c0_7, %c0_8], %20 {strides = array<i32>} : memref<1x128xf32, #tpu.memory_space<vmem>>, vector<1x128xf32>,
    return
  }
  func.func @transform_0(%arg0: i32) -> (i32, i32) {
    %c0_i32 = arith.constant 0 : i32
    %c0_i32_0 = arith.constant 0 : i32
    %c0_i32_1 = arith.constant 0 : i32
    return %c0_i32, %c0_i32_0 : i32, i32
  }
  func.func @transform_1(%arg0: i32) -> (i32, i32) {
    %c0_i32 = arith.constant 0 : i32
    %c0_i32_0 = arith.constant 0 : i32
    %c0_i32_1 = arith.constant 0 : i32
    return %c0_i32, %c0_i32_0 : i32, i32
  }
  func.func @transform_2(%arg0: i32) -> (i32, i32) {
    %c0_i32 = arith.constant 0 : i32
    %c0_i32_0 = arith.constant 0 : i32
    %c0_i32_1 = arith.constant 0 : i32
    return %c0_i32, %c0_i32_0 : i32, i32
  }
  func.func @transform_3(%arg0: i32) -> (i32, i32) {
    %c0_i32 = arith.constant 0 : i32
    %c0_i32_0 = arith.constant 0 : i32
    %c0_i32_1 = arith.constant 0 : i32
    return %c0_i32, %c0_i32_0 : i32, i32
  }
  func.func @transform_4(%arg0: i32) -> (i32, i32) {
    %c0_i32 = arith.constant 0 : i32
    %c0_i32_0 = arith.constant 0 : i32
    return %c0_i32, %arg0 : i32, i32
  }
}

</mosaic_0001>

<bundles_post_ra>
// kernel: tpu_custom_call.1
= control target key start
LH: loop header
LB: loop body
LE: loop exit
PB: predicated region body
PF: predicated region fallthrough
CT: control target
= control target key end

     0   :  { %9 = vsyncpa [#allocation3], 0  ;;  %s1287_s0 = inlined_call_operand.hbm [shape: s32[2,128], index: 0, kind: input, shape index: {}]   ;;  %s1288_s1 = inlined_call_operand.vmem [shape: s32[2,128], index: 1, kind: input, shape index: {}]   ;;  %s1289_s2 = inlined_call_operand.hbm [shape: f32[32,64], index: 2, kind: input, shape index: {}]   ;;  %s1290_s3 = inlined_call_operand.hbm [shape: f32[32,96], index: 3, kind: input, shape index: {}]   ;;  %s1291_s4 = inlined_call_operand.hbm [shape: f32[1,256], index: 4, kind: output, shape index: {}]  }
   0x1   :  { %10 = vsyncpa [#allocation6], 0 }
   0x2   :  { %11 = vsyncpa [#allocation4], 0 }
   0x3   :  { %13 = vsyncpa [#allocation4 + $0x1], 0  ;;  %s1057_s15 = smov 0   ;;  %s1059_s16 = smov 0  }
   0x4   :  { %s1061_s17 = smov 0   ;;  %s1063_s18 = smov 0  }
   0x5 LB: > { %s1078_s19 = sadd.s32 4294967295, %s1023_s18   ;;  %s609_s20 = sadd.s32 4294967294, %s1023_s18   ;;  %s1023_s18 = sphi %s1063_s18, %s1318_s18   ;;  %s1019_s17 = sphi %s1061_s17, %s1317_s17   ;;  %s1015_s16 = sphi %s1059_s16, %s1316_s16   ;;  %s1011_s15 = sphi %s1057_s15, %s1315_s15  }
   0x6   : > { %s1082_s21 = sadd.s32 1, %s1023_s18   ;;  %s110_s22 = sadd.s32 1, %s1019_s17 }
   0x7   : > { %s107_s23 = ssub.s32 %s1023_s18, %s1082_s21  ;;  %p120_p0 = scmp.ne.s32.totalorder %s1019_s17, %s1015_s16 }
   0x8   : > { %p108_p1 = scmp.eq.s32.totalorder %s107_s23, 0  ;;  %p121_p2 = scmp.eq.s32.totalorder %s1078_s19, 1 }
   0x9   : > { %p126_p3 = scmp.ne.s32.totalorder %s1015_s16, %s1011_s15  ;;  %p127_p4 = scmp.eq.s32.totalorder %s609_s20, 1 }
   0xa   : > { %s1093_s24 = scalar_select %p108_p1, %s1019_s17, %s110_s22  }
   0xb   : > { %p1095_p5 = por %p121_p2, %p120_p0  ;;  %p1099_p6 = por %p127_p4, %p126_p3 }
   0xc   : > { %p610_p7 = scmp.ge.s32.totalorder %s1023_s18, 1  ;;  %p134_p8 = scmp.lt.s32.totalorder %s1023_s18, 3 }
   0xd   : > { %s1296_s25 = scalar_select %p1095_p5, 1, 0 }
   0xe   : > { %s1297_s26 = scalar_select %p1099_p6, 1, 0 }
   0xf   : > { %p1292_p9 = scmp.eq.s32.totalorder %s1078_s19, 0  ;;  %p1106_p10 = pnand %p610_p7, %p134_p8 }
  0x10   : > { %s1025_s28 = smov [#allocation5]   ;;  %s1026_s5 = smov [#allocation2]  }
  0x11   : > { %s1298_s27 = scalar_select %p1106_p10, 1, 0 }
  0x12   : > { %s160_s29 = sshll.u32 %s1025_s28, 4  ;;  %p810_p11 = pneg %p1106_p10  ;;  %s1112_s29 = int_to_ptr.vmem [resolvable:$true] %s160_s29 }
  0x13   : > { %s147_s6 = sshll.u32 %s1026_s5, 4  ;;  %s1027_s7 = smov [#allocation7]   ;;  %s1120_s6 = int_to_ptr.vmem [resolvable:$true] %s147_s6 }
  0x14   : > { %p1116_p12 = pnand %p1292_p9, %p810_p11  ;;  %s1122_s8 = sshll.u32 %s1027_s7, 4  ;;  %s174_s8 = int_to_ptr.vmem [resolvable:$true] %s1122_s8 }
  0x15   : > { %s869_s11 = scalar_lea.hbm %s1289_s2, 512 }
  0x16   : > { %p870_p13 = scmp.ne.s32.totalorder %s1289_s2, %s869_s11  ;;  %p1132_p0 = pneg %p1116_p12 }
  0x17   : > { %p876_p3 = scmp.lt.u32.totalorder %s869_s11, %s1289_s2 }
  0x18   : > { %p872_p1 = pnand %p1132_p0, %p870_p13 }
  0x1a   : > { %p873_p2 = pneg %p872_p1 }
  0x1c   : > { %p878_p4 = pnand %p876_p3, %p873_p2 }
  0x1e   : > { %881 = shalt.err (!%p878_p4)
}
  0x1f   : > { %s882_s23 = scalar_lea.vmem %s1112_s29, 512  ;;  %p890_p9 = scmp.lt.s32.totalorder %s1112_s29, %s1112_s29 }
  0x20   : > { %p883_p7 = scmp.ne.s32.totalorder %s1112_s29, %s882_s23  ;;  %p891_p6 = scmp.lt.s32.totalorder %s882_s23, %s882_s23 }
  0x22   : > { %p885_p8 = pnand %p883_p7, %p1132_p0  ;;  %p892_p13 = por %p891_p6, %p890_p9 }
  0x24   : > { %p886_p11 = pneg %p885_p8 }
  0x26   : > { %p893_p1 = pnand %p892_p13, %p886_p11 }
  0x28   : > { %896 = shalt.err (!%p893_p1)
}
  0x29   : > { %s1028_s28 = smov 128   ;;  %s1029_s5 = smov 8  }
  0x2a   : > { %816 = dma.hbm_to_vmem [thread:$0]  (!%p1116_p12), %s1289_s2, 512, %s1112_s29, [#allocation6], %s1028_s28, %s1028_s28, %s1029_s5  }
  0x2b   : > { %s897_s12 = scalar_lea.hbm %s1287_s0, 32 }
  0x2c   : > { %p898_p6 = scmp.ne.s32.totalorder %s1287_s0, %s897_s12  ;;  %p904_p3 = scmp.lt.u32.totalorder %s897_s12, %s1287_s0 }
  0x2e   : > { %p900_p9 = pnand %p898_p6, %p1132_p0 }
  0x30   : > { %p901_p2 = pneg %p900_p9 }
  0x32   : > { %p906_p4 = pnand %p904_p3, %p901_p2 }
  0x34   : > { %909 = shalt.err (!%p906_p4)
}
  0x35   : > { %s910_s29 = scalar_lea.vmem %s1120_s6, 32  ;;  %p918_p13 = scmp.lt.s32.totalorder %s1120_s6, %s1120_s6 }
  0x36   : > { %p911_p7 = scmp.ne.s32.totalorder %s1120_s6, %s910_s29  ;;  %p919_p1 = scmp.lt.s32.totalorder %s910_s29, %s910_s29 }
  0x38   : > { %p913_p8 = pnand %p911_p7, %p1132_p0  ;;  %p920_p6 = por %p919_p1, %p918_p13 }
  0x3a   : > { %p914_p11 = pneg %p913_p8 }
  0x3c   : > { %p921_p9 = pnand %p920_p6, %p914_p11 }
  0x3e   : > { %924 = shalt.err (!%p921_p9)
}
  0x3f   : > { %813 = dma.hbm_to_vmem [thread:$0]  (!%p1116_p12), %s1287_s0, 32, %s1120_s6, [#allocation3]  }
  0x40   : > { %s925_s12 = scalar_lea.hbm %s1290_s3, 512 }
  0x41   : > { %p926_p2 = scmp.ne.s32.totalorder %s1290_s3, %s925_s12  ;;  %p932_p7 = scmp.lt.u32.totalorder %s925_s12, %s1290_s3 }
  0x43   : > { %p928_p3 = pnand %p926_p2, %p1132_p0 }
  0x45   : > { %p929_p4 = pneg %p928_p3 }
  0x47   : > { %p934_p8 = pnand %p932_p7, %p929_p4 }
  0x49   : > { %937 = shalt.err (!%p934_p8)
}
  0x4a   : > { %s938_s29 = scalar_lea.vmem %s174_s8, 512  ;;  %p946_p6 = scmp.lt.s32.totalorder %s174_s8, %s174_s8 }
  0x4b   : > { %p939_p11 = scmp.ne.s32.totalorder %s174_s8, %s938_s29  ;;  %p947_p9 = scmp.lt.s32.totalorder %s938_s29, %s938_s29 }
  0x4d   : > { %p941_p13 = pnand %p939_p11, %p1132_p0  ;;  %p948_p5 = por %p947_p9, %p946_p6 }
  0x4f   : > { %p942_p1 = pneg %p941_p13 }
  0x51   : > { %p949_p10 = pnand %p948_p5, %p942_p1 }
  0x53   : > { %952 = shalt.err (!%p949_p10)
}
  0x54   : > { %819 = dma.hbm_to_vmem [thread:$0]  (!%p1116_p12), %s1290_s3, 512, %s174_s8, [#allocation6], %s1028_s28, %s1028_s28, %s1029_s5  }
  0x55   : > { %p1301_p2 = scmp.ne.s32.totalorder %s1298_s27, 0 }
  0x56   : > { %p1302_p0 = scmp.eq.s32.totalorder (!%p1301_p2), %s1078_s19, 0 }
  0x57   : > { %189 = sbr.rel (%p1301_p2) target bundleno = 379 (0x17b), region = 36 }
  0x5e   : > { %998 = dma.done.wait (%p1302_p0), [#allocation3], 32   ;;  %p1303_p3 = pmov %p1302_p0 }
  0x5f   : > { %p1304_p5 = pmov %p1302_p0 }
  0x60   : > { %1000 = vsyncadd (%p1303_p3), [#allocation3], 4294967264 }
  0x61   : > { %1002 = dma.done.wait (%p1304_p5), [#allocation6], 1024   ;;  %p1305_p10 = pmov %p1302_p0 }
  0x62   : > { %v221_v0 = vlaneseq  ;;  %s219_s27 = scalar_lea.vmem %s1288_s1, %s1078_s19  ;;  %vm306_vm0 = vcmask 523264   ;;  %vm1295_vm1 = vcmask 785408   ;;  %s672_s14 = scalar_lea.vmem [#allocation2], %s1023_s18  ;;  %v302_v9 = vld [vmem:[#allocation5] sm:$0xff]  ;;  %v1030_v11 = vmov 1.0|1.0  }
  0x63   : > { %1004 = vsyncadd (%p1305_p10), [#allocation6], 4294966272  ;;  %v628_v7 = vld [vmem:[%s219_s27] ss:$0 sm:$0xff]  ;;  %v675_v8 = vld [vmem:[%s672_s14 - $0x1] ss:$0 sm:$0xff]  ;;  %720 = vmatprep.mubr.msk.f32.mxu0 %vm306_vm0, %v302_v9 }
  0x64   : > { %v222_v1 = vshrl.u32 %v221_v0, 7  ;;  %v404_v10 = vld [vmem:[#allocation7] sm:$0xff]  ;;  %v303_v20 = vld [vmem:[#allocation5 + $0x8] sm:$0xff]  ;;  %v304_v21 = vld [vmem:[#allocation5 + $0x10] sm:$0xff]  ;;  %s215_s28 = sand.u32 1, %s1015_s16   ;;  %s669_s5 = sshll.u32 %s1078_s19, 4 }
  0x65   : > { %750 = vmatprep.mubr.msk.f32.mxu1 %vm1295_vm1, %v404_v10  ;;  %v305_v22 = vld [vmem:[#allocation5 + $0x18] sm:$0xff]  ;;  %v405_v23 = vld [vmem:[#allocation7 + $0x8] sm:$0xff]  ;;  %v406_v24 = vld [vmem:[#allocation7 + $0x10] sm:$0xff]  ;;  %s216_s9 = scalar_lea.vmem [#allocation8], %s215_s28  ;;  %s1245_s13 = scalar_lea.hbm %s1291_s4, %s669_s5 }
  0x66   : > { %v223_v2 = vadd.s32 8, %v222_v1  ;;  %v224_v3 = vadd.s32 16, %v222_v1  ;;  %v225_v4 = vadd.s32 24, %v222_v1  ;;  %v226_v5 = vadd.s32 32, %v222_v1  ;;  %v407_v25 = vld [vmem:[#allocation7 + $0x18] sm:$0xff]  ;;  %s533_s10 = sshll.u32 %s216_s9, 4  ;;  %s1247_s10 = int_to_ptr.vmem [resolvable:$true] %s533_s10 }
  0x67   : > { %v227_v6 = vadd.s32 40, %v222_v1  ;;  %vm266_vm2 = vcmp.eq.s32.totalorder %v222_v1, %v628_v7  ;;  %vm234_vm7 = vcmp.eq.s32.totalorder %v222_v1, %v675_v8  ;;  %v228_v13 = vadd.s32 48, %v222_v1  ;;  %s521_s20 = scalar_lea.sflag [#allocation4], %s215_s28  ;;  %s953_s22 = scalar_lea.vmem %s1247_s10, 16 }
  0x68   : > { %vm267_vm3 = vcmp.eq.s32.totalorder %v223_v2, %v628_v7  ;;  %vm268_vm4 = vcmp.eq.s32.totalorder %v224_v3, %v628_v7  ;;  %vm269_vm5 = vcmp.eq.s32.totalorder %v225_v4, %v628_v7  ;;  %vm235_vm8 = vcmp.eq.s32.totalorder %v223_v2, %v675_v8  ;;  %p954_p12 = scmp.ne.s32.totalorder %s1247_s10, %s953_s22  ;;  %p1313_p4 = scmp.ne.s32.totalorder %s1296_s25, 0 }
  0x69   : > { %vm772_vm6 = vmpackc.low %vm267_vm3, %vm266_vm2  ;;  %vm270_vm9 = vcmp.eq.s32.totalorder %v226_v5, %v628_v7  ;;  %vm271_vm10 = vcmp.eq.s32.totalorder %v227_v6, %v628_v7  ;;  %vm236_vm12 = vcmp.eq.s32.totalorder %v224_v3, %v675_v8  ;;  %vm237_vm13 = vcmp.eq.s32.totalorder %v225_v4, %v675_v8  ;;  %s1031_s19 = smov [#allocation8]  }
  0x6a   : > { %773 = vmatprep.subr.msk.bf16.mxu1 %vm772_vm6, %v1030_v11  ;;  %vm1218_vm11 = vmpackc.low %vm269_vm5, %vm268_vm4  ;;  %v229_v14 = vadd.s32 56, %v222_v1  ;;  %vm238_vm2 = vcmp.eq.s32.totalorder %v226_v5, %v675_v8  ;;  %vm239_vm3 = vcmp.eq.s32.totalorder %v227_v6, %v675_v8  ;;  %vm272_vm5 = vcmp.eq.s32.totalorder %v228_v13, %v628_v7  ;;  %p955_p7 = pnand %p954_p12, %p1313_p4  ;;  %s957_s23 = sshll.u32 %s1031_s19, 4  ;;  %s958_s23 = int_to_ptr.vmem [resolvable:$false] %s957_s23 }
  0x6b   : > { %775 = vmatpush3.bf16.msk.msra.mxu1 %vm772_vm6, %v1030_v11  ;;  %vm756_vm14 = vmpackc.low %vm235_vm8, %vm234_vm7  ;;  %v258_v16 = vadd.s32 64, %v222_v1  ;;  %v259_v17 = vadd.s32 72, %v222_v1  ;;  %vm240_vm7 = vcmp.eq.s32.totalorder %v228_v13, %v675_v8  ;;  %v260_v18 = vadd.s32 80, %v222_v1  ;;  %s959_s29 = scalar_lea.vmem %s958_s23, 32  ;;  %p960_p11 = scmp.lt.s32.totalorder %s1247_s10, %s958_s23 }
  0x6c   : > { %777 = vmatprep.subr.msk.bf16.mxu1 %vm1218_vm11, %v1030_v11  ;;  %757 = vmatprep.subr.msk.bf16.mxu0 %vm756_vm14, %v1030_v11  ;;  %vm1224_vm15 = vmpackc.low %vm271_vm10, %vm270_vm9  ;;  %vm273_vm1 = vcmp.eq.s32.totalorder %v229_v14, %v628_v7  ;;  %vm241_vm8 = vcmp.eq.s32.totalorder %v229_v14, %v675_v8  ;;  %v261_v19 = vadd.s32 88, %v222_v1  ;;  %p956_p8 = pneg %p955_p7  ;;  %p961_p13 = scmp.lt.s32.totalorder %s959_s29, %s953_s22 }
  0x6d   : > { %759 = vmatpush3.bf16.msk.msra.mxu0 %vm756_vm14, %v1030_v11  ;;  %vm760_vm4 = vmpackc.low %vm237_vm13, %vm236_vm12  ;;  %vm274_vm10 = vcmp.eq.s32.totalorder %v258_v16, %v628_v7  ;;  %vm275_vm14 = vcmp.eq.s32.totalorder %v259_v17, %v628_v7  ;;  %vm276_vm13 = vcmp.eq.s32.totalorder %v260_v18, %v628_v7 }
  0x6e   : > { %761 = vmatprep.subr.msk.bf16.mxu0 %vm760_vm4, %v1030_v11  ;;  %vm764_vm6 = vmpackc.low %vm239_vm3, %vm238_vm2  ;;  %vm277_vm2 = vcmp.eq.s32.totalorder %v261_v19, %v628_v7  ;;  %p962_p1 = por %p961_p13, %p960_p11 }
  0x6f   : > { %779 = vmatpush3.bf16.msk.msra.mxu1 %vm1218_vm11, %v1030_v11  ;;  %vm784_vm9 = vmpackc.low %vm273_vm1, %vm272_vm5  ;;  %vm1310_vm1 = vcmask 785408  }
  0x70   : > { %781 = vmatprep.subr.msk.bf16.mxu1 %vm1224_vm15, %v1030_v11  ;;  %vm768_vm12 = vmpackc.low %vm241_vm8, %vm240_vm7  ;;  %p963_p6 = pnand %p962_p1, %p956_p8 }
  0x71   : > { %763 = vmatpush3.bf16.msk.msra.mxu0 %vm760_vm4, %v1030_v11  ;;  %vm788_vm11 = vmpackc.low %vm275_vm14, %vm274_vm10 }
  0x72   : > { %765 = vmatprep.subr.msk.bf16.mxu0 %vm764_vm6, %v1030_v11  ;;  %vm792_vm3 = vmpackc.low %vm277_vm2, %vm276_vm13 }
  0x73   : > { %783 = vmatpush3.bf16.msk.msra.mxu1 %vm1224_vm15, %v1030_v11  ;;  %vm1311_vm15 = vmmov %vm1310_vm1 }
  0x74   : > { %785 = vmatprep.subr.msk.bf16.mxu1 %vm784_vm9, %v1030_v11  ;;  %vm1312_vm4 = vmmov %vm1310_vm1 }
  0x75   : > { %767 = vmatpush3.bf16.msk.msra.mxu0 %vm764_vm6, %v1030_v11 }
  0x76   : > { %769 = vmatprep.subr.msk.bf16.mxu0 %vm768_vm12, %v1030_v11 }
  0x77   : > { %787 = vmatpush3.bf16.msk.msra.mxu1 %vm784_vm9, %v1030_v11 }
  0x78   : > { %789 = vmatprep.subr.msk.bf16.mxu1 %vm788_vm11, %v1030_v11 }
  0x79   : > { %771 = vmatpush3.bf16.msk.msra.mxu0 %vm768_vm12, %v1030_v11 }
  0x7b   : > { %791 = vmatpush3.bf16.msk.msra.mxu1 %vm788_vm11, %v1030_v11 }
  0x7c   : > { %793 = vmatprep.subr.msk.bf16.mxu1 %vm792_vm3, %v1030_v11  ;;  %721 = vmatmul.mubr.msk.f32.vlgmr.msra.gmra.mrb[0].mxu0 %vm306_vm0, %v303_v20 }
  0x7d   : > { %723 = vmatprep.mubr.msk.f32.mxu0 %vm306_vm0, %v304_v21 }
  0x7f   : > { %795 = vmatpush3.bf16.msk.msra.mxu1 %vm792_vm3, %v1030_v11 }
  0x80   : > { %724 = vmatmul.mubr.msk.f32.gmra.mrb[2].mxu0 %vm306_vm0, %v305_v22 }
  0x82   : > { %751 = vmatmul.mubr.msk.f32.vlgmr.msra.gmra.mrb[0].mxu1 %vm1310_vm1, %v405_v23 }
  0x83   : > { %753 = vmatprep.mubr.msk.f32.mxu1 %vm1311_vm15, %v406_v24 }
  0x86   : > { %754 = vmatmul.mubr.msk.f32.gmra.mrb[2].mxu1 %vm1312_vm4, %v407_v25 }
 0x14f   : > { %v722_v26 = vpop.f32.mrb[0].mxu0 }
 0x150   : > { %v385_v27 = vpop.f32.mrb[1].mxu0 }
 0x153   : > { %v725_v28 = vpop.f32.mrb[2].mxu0 }
 0x154   : > { %v395_v29 = vpop.f32.mrb[3].mxu0 }
 0x155   : > { %v752_v30 = vpop.f32.mrb[0].mxu1 }
 0x156   : > { %v507_v31 = vmul.f32 %v752_v30, %v722_v26  ;;  %v487_v32 = vpop.f32.mrb[1].mxu1 }
 0x157   : > { %v506_v33 = vmul.f32 %v487_v32, %v385_v27 }
 0x159   : > { %v510_v34 = vadd.f32 %v507_v31, %v506_v33  ;;  %v755_v35 = vpop.f32.mrb[2].mxu1 }
 0x15a   : > { %v509_v36 = vmul.f32 %v755_v35, %v725_v28  ;;  %v497_v37 = vpop.f32.mrb[3].mxu1 }
 0x15b   : > { %v508_v38 = vmul.f32 %v497_v37, %v395_v29 }
 0x15d   : > { %v511_v39 = vadd.f32 %v510_v34, %v508_v38 }
 0x15f   : > { %v512_v40 = vadd.f32 %v511_v39, %v509_v36 }
 0x161   : > { %v513_v41 = vrot.slane %v512_v40, 4 }
 0x163   : > { %v514_v42 = vadd.f32 %v513_v41, %v512_v40 }
 0x165   : > { %v515_v43 = vrot.slane %v514_v42, 2 }
 0x167   : > { %v516_v44 = vadd.f32 %v515_v43, %v514_v42 }
 0x169   : > { %v517_v45 = vrot.slane %v516_v44, 1 }
 0x16b   : > { %v518_v46 = vadd.f32 %v517_v45, %v516_v44 }
 0x16d   : > { %519 = vst [vmem:[%s216_s9] sm:$0x1] %v518_v46 }
 0x16e   : > { %966 = shalt.err (!%p963_p6)
}
 0x16f   : > { %s967_s6 = scalar_lea.hbm %s1245_s13, 16  ;;  %s971_s8 = scalar_lea.hbm %s1291_s4, 32 }
 0x170   : > { %p968_p9 = scmp.ne.s32.totalorder %s1245_s13, %s967_s6  ;;  %p972_p3 = scmp.lt.u32.totalorder %s1245_s13, %s1291_s4 }
 0x171   : > { %p973_p5 = scmp.lt.u32.totalorder %s971_s8, %s967_s6  ;;  %p975_p12 = scmp.lt.u32.totalorder %s967_s6, %s1245_s13 }
 0x172   : > { %p969_p2 = pnand %p968_p9, %p1313_p4 }
 0x173   : > { %p974_p10 = por %p973_p5, %p972_p3 }
 0x174   : > { %p970_p0 = pneg %p969_p2 }
 0x175   : > { %p976_p7 = por %p975_p12, %p974_p10 }
 0x177   : > { %p977_p8 = pnand %p976_p7, %p970_p0 }
 0x179   : > { %980 = shalt.err (!%p977_p8)
}
 0x17a   : > { %808 = dma.vmem_to_hbm [thread:$0]  (%p1313_p4), %s1247_s10, 16, %s1245_s13, %s521_s20  }
 0x17b PF: > { %p830_p11 = scmp.ge.s32.totalorder %s1023_s18, 2  ;;  %s545_s28 = sand.u32 1, %s1011_s15  }
 0x17c   : > { %p1314_p13 = scmp.ne.s32.totalorder %s1297_s26, 0  ;;  %s546_s5 = scalar_lea.sflag [#allocation4], %s545_s28 }
 0x17e   : > { %p821_p1 = pnand %p830_p11, %p1314_p13 }
 0x180   : > { %1006 = dma.done.wait (!%p821_p1), %s546_s5, 16  }
 0x181   : > { %1008 = vsyncadd (!%p821_p1), %s546_s5, 4294967280  ;;  %p16_p6 = scmp.ge.s32.totalorder %s1082_s21, 4   ;;  %s1315_s15 = smov %s1015_s16 }
 0x182   : > { %s1316_s16 = smov %s1019_s17  ;;  %s1317_s17 = smov %s1093_s24 }
 0x183   : > { %s1318_s18 = smov %s1082_s21  ;;  %18 = sbr.rel (!%p16_p6) target bundleno = 5 (0x5), region = 83 }
 0x18a   :  { %550 = vsyncpa [#allocation3], 1 }
 0x18b   :  { %552 = vsyncpa [#allocation3 + $0x1], 1 }
 0x18c   :  { %553 = vsyncpa [#allocation6], 1 }
 0x18d   :  { %554 = vsyncpa [#allocation4], 1 }
 0x18e   :  { %556 = vsyncpa [#allocation4 + $0x1], 1 }

// kernel: tpu_custom_call.1
= control target key start
LH: loop header
LB: loop body
LE: loop exit
PB: predicated region body
PF: predicated region fallthrough
CT: control target
= control target key end

     0   :  { %9 = vsyncpa [#allocation3], 0  ;;  %s1287_s0 = inlined_call_operand.hbm [shape: s32[2,128], index: 0, kind: input, shape index: {}]   ;;  %s1288_s1 = inlined_call_operand.vmem [shape: s32[2,128], index: 1, kind: input, shape index: {}]   ;;  %s1289_s2 = inlined_call_operand.hbm [shape: f32[32,64], index: 2, kind: input, shape index: {}]   ;;  %s1290_s3 = inlined_call_operand.hbm [shape: f32[32,96], index: 3, kind: input, shape index: {}]   ;;  %s1291_s4 = inlined_call_operand.hbm [shape: f32[1,256], index: 4, kind: output, shape index: {}]  }
   0x1   :  { %10 = vsyncpa [#allocation6], 0 }
   0x2   :  { %11 = vsyncpa [#allocation4], 0 }
   0x3   :  { %13 = vsyncpa [#allocation4 + $0x1], 0  ;;  %s1057_s15 = smov 0   ;;  %s1059_s16 = smov 0  }
   0x4   :  { %s1061_s17 = smov 0   ;;  %s1063_s18 = smov 0  }
   0x5 LB: > { %s1078_s19 = sadd.s32 4294967295, %s1023_s18   ;;  %s609_s20 = sadd.s32 4294967294, %s1023_s18   ;;  %s1023_s18 = sphi %s1063_s18, %s1318_s18   ;;  %s1019_s17 = sphi %s1061_s17, %s1317_s17   ;;  %s1015_s16 = sphi %s1059_s16, %s1316_s16   ;;  %s1011_s15 = sphi %s1057_s15, %s1315_s15  }
   0x6   : > { %s1082_s21 = sadd.s32 1, %s1023_s18   ;;  %s110_s22 = sadd.s32 1, %s1019_s17 }
   0x7   : > { %s107_s23 = ssub.s32 %s1023_s18, %s1082_s21  ;;  %p120_p0 = scmp.ne.s32.totalorder %s1019_s17, %s1015_s16 }
   0x8   : > { %p108_p1 = scmp.eq.s32.totalorder %s107_s23, 0  ;;  %p121_p2 = scmp.eq.s32.totalorder %s1078_s19, 1 }
   0x9   : > { %p126_p3 = scmp.ne.s32.totalorder %s1015_s16, %s1011_s15  ;;  %p127_p4 = scmp.eq.s32.totalorder %s609_s20, 1 }
   0xa   : > { %s1093_s24 = scalar_select %p108_p1, %s1019_s17, %s110_s22  }
   0xb   : > { %p1095_p5 = por %p121_p2, %p120_p0  ;;  %p1099_p6 = por %p127_p4, %p126_p3 }
   0xc   : > { %p610_p7 = scmp.ge.s32.totalorder %s1023_s18, 1  ;;  %p134_p8 = scmp.lt.s32.totalorder %s1023_s18, 3 }
   0xd   : > { %s1296_s25 = scalar_select %p1095_p5, 1, 0 }
   0xe   : > { %s1297_s26 = scalar_select %p1099_p6, 1, 0 }
   0xf   : > { %p1292_p9 = scmp.eq.s32.totalorder %s1078_s19, 0  ;;  %p1106_p10 = pnand %p610_p7, %p134_p8 }
  0x10   : > { %s1025_s28 = smov [#allocation5]   ;;  %s1026_s5 = smov [#allocation2]  }
  0x11   : > { %s1298_s27 = scalar_select %p1106_p10, 1, 0 }
  0x12   : > { %s160_s29 = sshll.u32 %s1025_s28, 4  ;;  %p810_p11 = pneg %p1106_p10  ;;  %s1112_s29 = int_to_ptr.vmem [resolvable:$true] %s160_s29 }
  0x13   : > { %s147_s6 = sshll.u32 %s1026_s5, 4  ;;  %s1027_s7 = smov [#allocation7]   ;;  %s1120_s6 = int_to_ptr.vmem [resolvable:$true] %s147_s6 }
  0x14   : > { %p1116_p12 = pnand %p1292_p9, %p810_p11  ;;  %s1122_s8 = sshll.u32 %s1027_s7, 4  ;;  %s174_s8 = int_to_ptr.vmem [resolvable:$true] %s1122_s8 }
  0x15   : > { %s869_s11 = scalar_lea.hbm %s1289_s2, 512 }
  0x16   : > { %p870_p13 = scmp.ne.s32.totalorder %s1289_s2, %s869_s11  ;;  %p1132_p0 = pneg %p1116_p12 }
  0x17   : > { %p876_p3 = scmp.lt.u32.totalorder %s869_s11, %s1289_s2 }
  0x18   : > { %p872_p1 = pnand %p1132_p0, %p870_p13 }
  0x1a   : > { %p873_p2 = pneg %p872_p1 }
  0x1c   : > { %p878_p4 = pnand %p876_p3, %p873_p2 }
  0x1e   : > { %881 = shalt.err (!%p878_p4)
}
  0x1f   : > { %s882_s23 = scalar_lea.vmem %s1112_s29, 512  ;;  %p890_p9 = scmp.lt.s32.totalorder %s1112_s29, %s1112_s29 }
  0x20   : > { %p883_p7 = scmp.ne.s32.totalorder %s1112_s29, %s882_s23  ;;  %p891_p6 = scmp.lt.s32.totalorder %s882_s23, %s882_s23 }
  0x22   : > { %p885_p8 = pnand %p883_p7, %p1132_p0  ;;  %p892_p13 = por %p891_p6, %p890_p9 }
  0x24   : > { %p886_p11 = pneg %p885_p8 }
  0x26   : > { %p893_p1 = pnand %p892_p13, %p886_p11 }
  0x28   : > { %896 = shalt.err (!%p893_p1)
}
  0x29   : > { %s1028_s28 = smov 128   ;;  %s1029_s5 = smov 8  }
  0x2a   : > { %816 = dma.hbm_to_vmem [thread:$0]  (!%p1116_p12), %s1289_s2, 512, %s1112_s29, [#allocation6], %s1028_s28, %s1028_s28, %s1029_s5  }
  0x2b   : > { %s897_s12 = scalar_lea.hbm %s1287_s0, 32 }
  0x2c   : > { %p898_p6 = scmp.ne.s32.totalorder %s1287_s0, %s897_s12  ;;  %p904_p3 = scmp.lt.u32.totalorder %s897_s12, %s1287_s0 }
  0x2e   : > { %p900_p9 = pnand %p898_p6, %p1132_p0 }
  0x30   : > { %p901_p2 = pneg %p900_p9 }
  0x32   : > { %p906_p4 = pnand %p904_p3, %p901_p2 }
  0x34   : > { %909 = shalt.err (!%p906_p4)
}
  0x35   : > { %s910_s29 = scalar_lea.vmem %s1120_s6, 32  ;;  %p918_p13 = scmp.lt.s32.totalorder %s1120_s6, %s1120_s6 }
  0x36   : > { %p911_p7 = scmp.ne.s32.totalorder %s1120_s6, %s910_s29  ;;  %p919_p1 = scmp.lt.s32.totalorder %s910_s29, %s910_s29 }
  0x38   : > { %p913_p8 = pnand %p911_p7, %p1132_p0  ;;  %p920_p6 = por %p919_p1, %p918_p13 }
  0x3a   : > { %p914_p11 = pneg %p913_p8 }
  0x3c   : > { %p921_p9 = pnand %p920_p6, %p914_p11 }
  0x3e   : > { %924 = shalt.err (!%p921_p9)
}
  0x3f   : > { %813 = dma.hbm_to_vmem [thread:$0]  (!%p1116_p12), %s1287_s0, 32, %s1120_s6, [#allocation3]  }
  0x40   : > { %s925_s12 = scalar_lea.hbm %s1290_s3, 512 }
  0x41   : > { %p926_p2 = scmp.ne.s32.totalorder %s1290_s3, %s925_s12  ;;  %p932_p7 = scmp.lt.u32.totalorder %s925_s12, %s1290_s3 }
  0x43   : > { %p928_p3 = pnand %p926_p2, %p1132_p0 }
  0x45   : > { %p929_p4 = pneg %p928_p3 }
  0x47   : > { %p934_p8 = pnand %p932_p7, %p929_p4 }
  0x49   : > { %937 = shalt.err (!%p934_p8)
}
  0x4a   : > { %s938_s29 = scalar_lea.vmem %s174_s8, 512  ;;  %p946_p6 = scmp.lt.s32.totalorder %s174_s8, %s174_s8 }
  0x4b   : > { %p939_p11 = scmp.ne.s32.totalorder %s174_s8, %s938_s29  ;;  %p947_p9 = scmp.lt.s32.totalorder %s938_s29, %s938_s29 }
  0x4d   : > { %p941_p13 = pnand %p939_p11, %p1132_p0  ;;  %p948_p5 = por %p947_p9, %p946_p6 }
  0x4f   : > { %p942_p1 = pneg %p941_p13 }
  0x51   : > { %p949_p10 = pnand %p948_p5, %p942_p1 }
  0x53   : > { %952 = shalt.err (!%p949_p10)
}
  0x54   : > { %819 = dma.hbm_to_vmem [thread:$0]  (!%p1116_p12), %s1290_s3, 512, %s174_s8, [#allocation6], %s1028_s28, %s1028_s28, %s1029_s5  }
  0x55   : > { %p1301_p2 = scmp.ne.s32.totalorder %s1298_s27, 0 }
  0x56   : > { %p1302_p0 = scmp.eq.s32.totalorder (!%p1301_p2), %s1078_s19, 0 }
  0x57   : > { %189 = sbr.rel (%p1301_p2) target bundleno = 379 (0x17b), region = 36 }
  0x5e   : > { %998 = dma.done.wait (%p1302_p0), [#allocation3], 32   ;;  %p1303_p3 = pmov %p1302_p0 }
  0x5f   : > { %p1304_p5 = pmov %p1302_p0 }
  0x60   : > { %1000 = vsyncadd (%p1303_p3), [#allocation3], 4294967264 }
  0x61   : > { %1002 = dma.done.wait (%p1304_p5), [#allocation6], 1024   ;;  %p1305_p10 = pmov %p1302_p0 }
  0x62   : > { %v221_v0 = vlaneseq  ;;  %s219_s27 = scalar_lea.vmem %s1288_s1, %s1078_s19  ;;  %vm306_vm0 = vcmask 523264   ;;  %vm1295_vm1 = vcmask 785408   ;;  %s672_s14 = scalar_lea.vmem [#allocation2], %s1023_s18  ;;  %v302_v9 = vld [vmem:[#allocation5] sm:$0xff]  ;;  %v1030_v11 = vmov 1.0|1.0  }
  0x63   : > { %1004 = vsyncadd (%p1305_p10), [#allocation6], 4294966272  ;;  %v628_v7 = vld [vmem:[%s219_s27] ss:$0 sm:$0xff]  ;;  %v675_v8 = vld [vmem:[%s672_s14 - $0x1] ss:$0 sm:$0xff]  ;;  %720 = vmatprep.mubr.msk.f32.mxu0 %vm306_vm0, %v302_v9 }
  0x64   : > { %v222_v1 = vshrl.u32 %v221_v0, 7  ;;  %v404_v10 = vld [vmem:[#allocation7] sm:$0xff]  ;;  %v303_v20 = vld [vmem:[#allocation5 + $0x8] sm:$0xff]  ;;  %v304_v21 = vld [vmem:[#allocation5 + $0x10] sm:$0xff]  ;;  %s215_s28 = sand.u32 1, %s1015_s16   ;;  %s669_s5 = sshll.u32 %s1078_s19, 4 }
  0x65   : > { %750 = vmatprep.mubr.msk.f32.mxu1 %vm1295_vm1, %v404_v10  ;;  %v305_v22 = vld [vmem:[#allocation5 + $0x18] sm:$0xff]  ;;  %v405_v23 = vld [vmem:[#allocation7 + $0x8] sm:$0xff]  ;;  %v406_v24 = vld [vmem:[#allocation7 + $0x10] sm:$0xff]  ;;  %s216_s9 = scalar_lea.vmem [#allocation8], %s215_s28  ;;  %s1245_s13 = scalar_lea.hbm %s1291_s4, %s669_s5 }
  0x66   : > { %v223_v2 = vadd.s32 8, %v222_v1  ;;  %v224_v3 = vadd.s32 16, %v222_v1  ;;  %v225_v4 = vadd.s32 24, %v222_v1  ;;  %v226_v5 = vadd.s32 32, %v222_v1  ;;  %v407_v25 = vld [vmem:[#allocation7 + $0x18] sm:$0xff]  ;;  %s533_s10 = sshll.u32 %s216_s9, 4  ;;  %s1247_s10 = int_to_ptr.vmem [resolvable:$true] %s533_s10 }
  0x67   : > { %v227_v6 = vadd.s32 40, %v222_v1  ;;  %vm266_vm2 = vcmp.eq.s32.totalorder %v222_v1, %v628_v7  ;;  %vm234_vm7 = vcmp.eq.s32.totalorder %v222_v1, %v675_v8  ;;  %v228_v13 = vadd.s32 48, %v222_v1  ;;  %s521_s20 = scalar_lea.sflag [#allocation4], %s215_s28  ;;  %s953_s22 = scalar_lea.vmem %s1247_s10, 16 }
  0x68   : > { %vm267_vm3 = vcmp.eq.s32.totalorder %v223_v2, %v628_v7  ;;  %vm268_vm4 = vcmp.eq.s32.totalorder %v224_v3, %v628_v7  ;;  %vm269_vm5 = vcmp.eq.s32.totalorder %v225_v4, %v628_v7  ;;  %vm235_vm8 = vcmp.eq.s32.totalorder %v223_v2, %v675_v8  ;;  %p954_p12 = scmp.ne.s32.totalorder %s1247_s10, %s953_s22  ;;  %p1313_p4 = scmp.ne.s32.totalorder %s1296_s25, 0 }
  0x69   : > { %vm772_vm6 = vmpackc.low %vm267_vm3, %vm266_vm2  ;;  %vm270_vm9 = vcmp.eq.s32.totalorder %v226_v5, %v628_v7  ;;  %vm271_vm10 = vcmp.eq.s32.totalorder %v227_v6, %v628_v7  ;;  %vm236_vm12 = vcmp.eq.s32.totalorder %v224_v3, %v675_v8  ;;  %vm237_vm13 = vcmp.eq.s32.totalorder %v225_v4, %v675_v8  ;;  %s1031_s19 = smov [#allocation8]  }
  0x6a   : > { %773 = vmatprep.subr.msk.bf16.mxu1 %vm772_vm6, %v1030_v11  ;;  %vm1218_vm11 = vmpackc.low %vm269_vm5, %vm268_vm4  ;;  %v229_v14 = vadd.s32 56, %v222_v1  ;;  %vm238_vm2 = vcmp.eq.s32.totalorder %v226_v5, %v675_v8  ;;  %vm239_vm3 = vcmp.eq.s32.totalorder %v227_v6, %v675_v8  ;;  %vm272_vm5 = vcmp.eq.s32.totalorder %v228_v13, %v628_v7  ;;  %p955_p7 = pnand %p954_p12, %p1313_p4  ;;  %s957_s23 = sshll.u32 %s1031_s19, 4  ;;  %s958_s23 = int_to_ptr.vmem [resolvable:$false] %s957_s23 }
  0x6b   : > { %775 = vmatpush3.bf16.msk.msra.mxu1 %vm772_vm6, %v1030_v11  ;;  %vm756_vm14 = vmpackc.low %vm235_vm8, %vm234_vm7  ;;  %v258_v16 = vadd.s32 64, %v222_v1  ;;  %v259_v17 = vadd.s32 72, %v222_v1  ;;  %vm240_vm7 = vcmp.eq.s32.totalorder %v228_v13, %v675_v8  ;;  %v260_v18 = vadd.s32 80, %v222_v1  ;;  %s959_s29 = scalar_lea.vmem %s958_s23, 32  ;;  %p960_p11 = scmp.lt.s32.totalorder %s1247_s10, %s958_s23 }
  0x6c   : > { %777 = vmatprep.subr.msk.bf16.mxu1 %vm1218_vm11, %v1030_v11  ;;  %757 = vmatprep.subr.msk.bf16.mxu0 %vm756_vm14, %v1030_v11  ;;  %vm1224_vm15 = vmpackc.low %vm271_vm10, %vm270_vm9  ;;  %vm273_vm1 = vcmp.eq.s32.totalorder %v229_v14, %v628_v7  ;;  %vm241_vm8 = vcmp.eq.s32.totalorder %v229_v14, %v675_v8  ;;  %v261_v19 = vadd.s32 88, %v222_v1  ;;  %p956_p8 = pneg %p955_p7  ;;  %p961_p13 = scmp.lt.s32.totalorder %s959_s29, %s953_s22 }
  0x6d   : > { %759 = vmatpush3.bf16.msk.msra.mxu0 %vm756_vm14, %v1030_v11  ;;  %vm760_vm4 = vmpackc.low %vm237_vm13, %vm236_vm12  ;;  %vm274_vm10 = vcmp.eq.s32.totalorder %v258_v16, %v628_v7  ;;  %vm275_vm14 = vcmp.eq.s32.totalorder %v259_v17, %v628_v7  ;;  %vm276_vm13 = vcmp.eq.s32.totalorder %v260_v18, %v628_v7 }
  0x6e   : > { %761 = vmatprep.subr.msk.bf16.mxu0 %vm760_vm4, %v1030_v11  ;;  %vm764_vm6 = vmpackc.low %vm239_vm3, %vm238_vm2  ;;  %vm277_vm2 = vcmp.eq.s32.totalorder %v261_v19, %v628_v7  ;;  %p962_p1 = por %p961_p13, %p960_p11 }
  0x6f   : > { %779 = vmatpush3.bf16.msk.msra.mxu1 %vm1218_vm11, %v1030_v11  ;;  %vm784_vm9 = vmpackc.low %vm273_vm1, %vm272_vm5  ;;  %vm1310_vm1 = vcmask 785408  }
  0x70   : > { %781 = vmatprep.subr.msk.bf16.mxu1 %vm1224_vm15, %v1030_v11  ;;  %vm768_vm12 = vmpackc.low %vm241_vm8, %vm240_vm7  ;;  %p963_p6 = pnand %p962_p1, %p956_p8 }
  0x71   : > { %763 = vmatpush3.bf16.msk.msra.mxu0 %vm760_vm4, %v1030_v11  ;;  %vm788_vm11 = vmpackc.low %vm275_vm14, %vm274_vm10 }
  0x72   : > { %765 = vmatprep.subr.msk.bf16.mxu0 %vm764_vm6, %v1030_v11  ;;  %vm792_vm3 = vmpackc.low %vm277_vm2, %vm276_vm13 }
  0x73   : > { %783 = vmatpush3.bf16.msk.msra.mxu1 %vm1224_vm15, %v1030_v11  ;;  %vm1311_vm15 = vmmov %vm1310_vm1 }
  0x74   : > { %785 = vmatprep.subr.msk.bf16.mxu1 %vm784_vm9, %v1030_v11  ;;  %vm1312_vm4 = vmmov %vm1310_vm1 }
  0x75   : > { %767 = vmatpush3.bf16.msk.msra.mxu0 %vm764_vm6, %v1030_v11 }
  0x76   : > { %769 = vmatprep.subr.msk.bf16.mxu0 %vm768_vm12, %v1030_v11 }
  0x77   : > { %787 = vmatpush3.bf16.msk.msra.mxu1 %vm784_vm9, %v1030_v11 }
  0x78   : > { %789 = vmatprep.subr.msk.bf16.mxu1 %vm788_vm11, %v1030_v11 }
  0x79   : > { %771 = vmatpush3.bf16.msk.msra.mxu0 %vm768_vm12, %v1030_v11 }
  0x7b   : > { %791 = vmatpush3.bf16.msk.msra.mxu1 %vm788_vm11, %v1030_v11 }
  0x7c   : > { %793 = vmatprep.subr.msk.bf16.mxu1 %vm792_vm3, %v1030_v11  ;;  %721 = vmatmul.mubr.msk.f32.vlgmr.msra.gmra.mrb[0].mxu0 %vm306_vm0, %v303_v20 }
  0x7d   : > { %723 = vmatprep.mubr.msk.f32.mxu0 %vm306_vm0, %v304_v21 }
  0x7f   : > { %795 = vmatpush3.bf16.msk.msra.mxu1 %vm792_vm3, %v1030_v11 }
  0x80   : > { %724 = vmatmul.mubr.msk.f32.gmra.mrb[2].mxu0 %vm306_vm0, %v305_v22 }
  0x82   : > { %751 = vmatmul.mubr.msk.f32.vlgmr.msra.gmra.mrb[0].mxu1 %vm1310_vm1, %v405_v23 }
  0x83   : > { %753 = vmatprep.mubr.msk.f32.mxu1 %vm1311_vm15, %v406_v24 }
  0x86   : > { %754 = vmatmul.mubr.msk.f32.gmra.mrb[2].mxu1 %vm1312_vm4, %v407_v25 }
 0x14f   : > { %v722_v26 = vpop.f32.mrb[0].mxu0 }
 0x150   : > { %v385_v27 = vpop.f32.mrb[1].mxu0 }
 0x153   : > { %v725_v28 = vpop.f32.mrb[2].mxu0 }
 0x154   : > { %v395_v29 = vpop.f32.mrb[3].mxu0 }
 0x155   : > { %v752_v30 = vpop.f32.mrb[0].mxu1 }
 0x156   : > { %v507_v31 = vmul.f32 %v752_v30, %v722_v26  ;;  %v487_v32 = vpop.f32.mrb[1].mxu1 }
 0x157   : > { %v506_v33 = vmul.f32 %v487_v32, %v385_v27 }
 0x159   : > { %v510_v34 = vadd.f32 %v507_v31, %v506_v33  ;;  %v755_v35 = vpop.f32.mrb[2].mxu1 }
 0x15a   : > { %v509_v36 = vmul.f32 %v755_v35, %v725_v28  ;;  %v497_v37 = vpop.f32.mrb[3].mxu1 }
 0x15b   : > { %v508_v38 = vmul.f32 %v497_v37, %v395_v29 }
 0x15d   : > { %v511_v39 = vadd.f32 %v510_v34, %v508_v38 }
 0x15f   : > { %v512_v40 = vadd.f32 %v511_v39, %v509_v36 }
 0x161   : > { %v513_v41 = vrot.slane %v512_v40, 4 }
 0x163   : > { %v514_v42 = vadd.f32 %v513_v41, %v512_v40 }
 0x165   : > { %v515_v43 = vrot.slane %v514_v42, 2 }
 0x167   : > { %v516_v44 = vadd.f32 %v515_v43, %v514_v42 }
 0x169   : > { %v517_v45 = vrot.slane %v516_v44, 1 }
 0x16b   : > { %v518_v46 = vadd.f32 %v517_v45, %v516_v44 }
 0x16d   : > { %519 = vst [vmem:[%s216_s9] sm:$0x1] %v518_v46 }
 0x16e   : > { %966 = shalt.err (!%p963_p6)
}
 0x16f   : > { %s967_s6 = scalar_lea.hbm %s1245_s13, 16  ;;  %s971_s8 = scalar_lea.hbm %s1291_s4, 32 }
 0x170   : > { %p968_p9 = scmp.ne.s32.totalorder %s1245_s13, %s967_s6  ;;  %p972_p3 = scmp.lt.u32.totalorder %s1245_s13, %s1291_s4 }
 0x171   : > { %p973_p5 = scmp.lt.u32.totalorder %s971_s8, %s967_s6  ;;  %p975_p12 = scmp.lt.u32.totalorder %s967_s6, %s1245_s13 }
 0x172   : > { %p969_p2 = pnand %p968_p9, %p1313_p4 }
 0x173   : > { %p974_p10 = por %p973_p5, %p972_p3 }
 0x174   : > { %p970_p0 = pneg %p969_p2 }
 0x175   : > { %p976_p7 = por %p975_p12, %p974_p10 }
 0x177   : > { %p977_p8 = pnand %p976_p7, %p970_p0 }
 0x179   : > { %980 = shalt.err (!%p977_p8)
}
 0x17a   : > { %808 = dma.vmem_to_hbm [thread:$0]  (%p1313_p4), %s1247_s10, 16, %s1245_s13, %s521_s20  }
 0x17b PF: > { %p830_p11 = scmp.ge.s32.totalorder %s1023_s18, 2  ;;  %s545_s28 = sand.u32 1, %s1011_s15  }
 0x17c   : > { %p1314_p13 = scmp.ne.s32.totalorder %s1297_s26, 0  ;;  %s546_s5 = scalar_lea.sflag [#allocation4], %s545_s28 }
 0x17e   : > { %p821_p1 = pnand %p830_p11, %p1314_p13 }
 0x180   : > { %1006 = dma.done.wait (!%p821_p1), %s546_s5, 16  }
 0x181   : > { %1008 = vsyncadd (!%p821_p1), %s546_s5, 4294967280  ;;  %p16_p6 = scmp.ge.s32.totalorder %s1082_s21, 4   ;;  %s1315_s15 = smov %s1015_s16 }
 0x182   : > { %s1316_s16 = smov %s1019_s17  ;;  %s1317_s17 = smov %s1093_s24 }
 0x183   : > { %s1318_s18 = smov %s1082_s21  ;;  %18 = sbr.rel (!%p16_p6) target bundleno = 5 (0x5), region = 83 }
 0x18a   :  { %550 = vsyncpa [#allocation3], 1 }
 0x18b   :  { %552 = vsyncpa [#allocation3 + $0x1], 1 }
 0x18c   :  { %553 = vsyncpa [#allocation6], 1 }
 0x18d   :  { %554 = vsyncpa [#allocation4], 1 }
 0x18e   :  { %556 = vsyncpa [#allocation4 + $0x1], 1 }

</bundles_post_ra>
